<compile_context>
chip_gen: v7x
topology: tpu7x:2x2x1
jax: 0.10.0
libtpu: 0.0.40
codegen_flags: <defaults>
</compile_context>

<pallas_src>
import functools

import jax
import jax.numpy as jnp
from jax.experimental import pallas as pl
from jax.experimental.pallas import tpu as pltpu


def _round_up(a, m):
    return (a + m - 1) // m * m


def _vmem_capacity_bytes():
    try:
        cap = pltpu.get_tpu_info().vmem_capacity_bytes
        if cap:
            return int(cap)
    except Exception:
        pass
    return 64 << 20  # conservative (v7x) fallback


def _num_tensorcores():
    try:
        info = pltpu.get_tpu_info()
        for attr in ("num_cores", "num_tensorcores", "core_count"):
            v = getattr(info, attr, None)
            if v:
                return int(v)
    except Exception:
        pass
    return 1


def roberta_output_kernel(x_ref, w_ref, b_ref, res_ref, gamma_ref, beta_ref,
                          o_ref, *, eps, inv_h, matmul_dtype):
    # dense: x @ W^T (+ bias). W is pre-transposed to [I, H]. The x cast to the
    # matmul dtype happens here (hidden under the MXU), accumulation is f32.
    x = x_ref[...].astype(matmul_dtype)
    h = jnp.dot(x, w_ref[...], preferred_element_type=jnp.float32)
    # dropout: identity in eval mode.
    # TODO(synk): training-mode dropout (mask + 1/(1-p) scaling) not implemented.
    y = h + b_ref[...] + res_ref[...].astype(jnp.float32)
    # LayerNorm over the hidden axis: two-pass statistics on the VMEM-resident
    # tile (the extra VPU/XLU traversal is free filler under the MXU).
    mean = jnp.sum(y, axis=-1, keepdims=True) * inv_h
    d = y - mean
    var = jnp.sum(d * d, axis=-1, keepdims=True) * inv_h
    yn = d * jax.lax.rsqrt(var + eps)
    o_ref[...] = (yn * gamma_ref[...] + beta_ref[...]).astype(o_ref.dtype)


def prepare_roberta_output_params(w, b, gamma, beta, *,
                                  matmul_dtype=jnp.bfloat16):
    """One-time parameter prep (do this outside the per-layer call):
    transpose the Linear weight [H, I] -> [I, H], cast it to the matmul dtype,
    and keep bias / LN params in f32 row vectors."""
    wt = jnp.asarray(w).T.astype(matmul_dtype)            # [I, H]
    b2 = jnp.asarray(b, jnp.float32).reshape(1, -1)       # [1, H]
    g2 = jnp.asarray(gamma, jnp.float32).reshape(1, -1)   # [1, H]
    be2 = jnp.asarray(beta, jnp.float32).reshape(1, -1)   # [1, H]
    return wt, b2, g2, be2


def roberta_output(hidden_states, input_tensor, wt, b2, g2, be2, *,
                   eps=1e-5, tm=512, matmul_dtype=jnp.bfloat16):
    """hidden_states: [B, S, I], input_tensor: [B, S, H]
       wt: [I, H] (pre-transposed, from prepare_roberta_output_params)
       b2/g2/be2: [1, H] f32."""
    B, S, I = hidden_states.shape
    H = input_tensor.shape[-1]
    M = B * S
    out_dtype = input_tensor.dtype

    itemsize_w = jnp.dtype(wt.dtype).itemsize
    itemsize_xin = jnp.dtype(hidden_states.dtype).itemsize
    itemsize_xmm = jnp.dtype(matmul_dtype).itemsize
    itemsize_r = jnp.dtype(input_tensor.dtype).itemsize
    itemsize_o = jnp.dtype(out_dtype).itemsize

    # --- VMEM budget (generation-aware) -------------------------------------
    phys_vmem = _vmem_capacity_bytes()
    if phys_vmem >= (96 << 20):
        vmem_cap = 100 << 20                 # v5e / v6e: 128 MiB physical
    else:
        vmem_cap = phys_vmem - (8 << 20)     # v7x: leave internal-scratch headroom

    def vmem_needed(t):
        return (I * H * itemsize_w                         # resident weight (1 buf)
                + 2 * t * I * itemsize_xin                 # x tile, native dtype (2 bufs)
                + t * I * itemsize_xmm                     # in-kernel bf16 copy of x
                + 2 * t * H * (itemsize_r + itemsize_o)    # residual / output (2 bufs)
                + 2 * t * H * 4                            # f32 acc + LN intermediate
                + 3 * H * 4                                # bias / gamma / beta (1 buf)
                + (4 << 20))                               # margin

    # --- tile size selection -------------------------------------------------
    tm_eff = _round_up(min(tm, _round_up(M, 8)), 8)

    # only on multi-TensorCore chips: keep enough grid steps for both cores
    num_cores = _num_tensorcores()
    if num_cores > 1:
        while tm_eff > 128 and pl.cdiv(M, tm_eff) < 2 * num_cores:
            tm_eff //= 2

    # never shrink below 128 rows unless M itself is that small
    tm_floor = min(128, _round_up(M, 8))
    while tm_eff > tm_floor and vmem_needed(tm_eff) > vmem_cap:
        tm_eff = max(tm_floor, tm_eff // 2)

    vmem_limit = int(min(max(vmem_needed(tm_eff), 32 << 20), vmem_cap))
    grid_m = pl.cdiv(M, tm_eff)

    # --- operand prep (views only, no extra HBM passes) ----------------------
    x2 = hidden_states.reshape(M, I)
    r2 = input_tensor.reshape(M, H)

    kernel = functools.partial(roberta_output_kernel, eps=float(eps),
                               inv_h=1.0 / float(H), matmul_dtype=matmul_dtype)

    cost = pl.CostEstimate(
        flops=2 * M * I * H + 10 * M * H,
        transcendentals=M,
        bytes_accessed=(M * I * itemsize_xin + I * H * itemsize_w
                        + M * H * (itemsize_r + itemsize_o) + 3 * H * 4),
    )

    out2 = pl.pallas_call(
        kernel,
        out_shape=jax.ShapeDtypeStruct((M, H), out_dtype),
        grid_spec=pltpu.PrefetchScalarGridSpec(
            num_scalar_prefetch=0,
            grid=(grid_m,),
            in_specs=[
                pl.BlockSpec((tm_eff, I), lambda i: (i, 0)),          # x tile (native dtype)
                pl.BlockSpec((I, H), lambda i: (0, 0),
                             pipeline_mode=pl.Buffered(1)),           # weight (resident)
                pl.BlockSpec((1, H), lambda i: (0, 0),
                             pipeline_mode=pl.Buffered(1)),           # bias
                pl.BlockSpec((tm_eff, H), lambda i: (i, 0)),          # residual tile
                pl.BlockSpec((1, H), lambda i: (0, 0),
                             pipeline_mode=pl.Buffered(1)),           # LN gamma
                pl.BlockSpec((1, H), lambda i: (0, 0),
                             pipeline_mode=pl.Buffered(1)),           # LN beta
            ],
            out_specs=pl.BlockSpec((tm_eff, H), lambda i: (i, 0)),
        ),
        compiler_params=pltpu.CompilerParams(
            dimension_semantics=("parallel",),
            vmem_limit_bytes=vmem_limit),
        cost_estimate=cost,
    )(x2, wt, b2, r2, g2, be2)

    return out2.reshape(B, S, H)


if __name__ == "__main__":
    # small config: intermediate_size=256, hidden_size=128
    B, S = 2, 8
    I, H = 256, 128
    eps = 1e-5   # pass config.layer_norm_eps explicitly in real use

    key = jax.random.PRNGKey(0)
    k1, k2, k3, k4, k5, k6 = jax.random.split(key, 6)

    hidden_states = jax.random.normal(k1, (B, S, I), dtype=jnp.float32)
    input_tensor = jax.random.normal(k2, (B, S, H), dtype=jnp.float32)

    # deterministic parameter init (synthetic, not a checkpoint)
    w = jax.random.normal(k3, (H, I), dtype=jnp.float32) * 0.02   # Linear weight [out, in]
    b = jax.random.normal(k4, (H,), dtype=jnp.float32) * 0.02
    gamma = 1.0 + 0.1 * jax.random.normal(k5, (H,), dtype=jnp.float32)
    beta = 0.1 * jax.random.normal(k6, (H,), dtype=jnp.float32)

    # one-time param prep (transpose + bf16 cast hoisted out of the layer call)
    wt, b2, g2, be2 = prepare_roberta_output_params(w, b, gamma, beta)

    out = roberta_output(hidden_states, input_tensor, wt, b2, g2, be2, eps=eps)
    jax.block_until_ready(out)

    # pure-JAX reference with the same bf16 matmul operands / f32 accumulation
    # (bf16 matmul operands are a deliberate inference-precision choice)
    x2 = hidden_states.reshape(-1, I).astype(jnp.bfloat16)
    h = jnp.dot(x2, w.T.astype(jnp.bfloat16),
                preferred_element_type=jnp.float32)
    y = h + b + input_tensor.reshape(-1, H)
    mu = y.mean(-1, keepdims=True)
    var = ((y - mu) ** 2).mean(-1, keepdims=True)
    ref_out = ((y - mu) * jax.lax.rsqrt(var + eps) * gamma + beta).reshape(B, S, H)

    assert jnp.allclose(out, ref_out, atol=2e-3, rtol=2e-3), (
        "max abs err = %g" % float(jnp.max(jnp.abs(out - ref_out))))

    print("KERNEL_OK")
</pallas_src>

<mosaic_0001>
module attributes {stable_mosaic.version = 11 : i64} {
  func.func @roberta_output_kernel(%arg0: i32, %arg1: memref<16x256xf32, #tpu.memory_space<vmem>>, %arg2: memref<256x128xbf16, #tpu.memory_space<vmem>>, %arg3: memref<1x128xf32, #tpu.memory_space<vmem>>, %arg4: memref<16x128xf32, #tpu.memory_space<vmem>>, %arg5: memref<1x128xf32, #tpu.memory_space<vmem>>, %arg6: memref<1x128xf32, #tpu.memory_space<vmem>>, %arg7: memref<16x128xf32, #tpu.memory_space<vmem>>) attributes {dimension_semantics = [#tpu.dimension_semantics<parallel>], iteration_bounds = array<i64: 1>, scalar_prefetch = 0 : i64, scratch_operands = 0 : i64, tpu.core_type = #tpu.core_type<tc>, window_params = [{transform_indices = @transform_0, window_bounds = array<i64: 16, 256>}, {pipeline_mode = #tpu.pipeline_mode<synchronous>, transform_indices = @transform_1, window_bounds = array<i64: 256, 128>}, {pipeline_mode = #tpu.pipeline_mode<synchronous>, transform_indices = @transform_2, window_bounds = array<i64: 1, 128>}, {transform_indices = @transform_3, window_bounds = array<i64: 16, 128>}, {pipeline_mode = #tpu.pipeline_mode<synchronous>, transform_indices = @transform_4, window_bounds = array<i64: 1, 128>}, {pipeline_mode = #tpu.pipeline_mode<synchronous>, transform_indices = @transform_5, window_bounds = array<i64: 1, 128>}, {transform_indices = @transform_6, window_bounds = array<i64: 16, 128>}]} {
    %c0 = arith.constant 0 : index
    %c0_0 = arith.constant 0 : index
    %0 = vector.load %arg1[%c0, %c0_0] : memref<16x256xf32, #tpu.memory_space<vmem>>, vector<16x256xf32>
    %1 = arith.truncf %0 : vector<16x256xf32> to vector<16x256xbf16>
    %c0_1 = arith.constant 0 : index
    %c0_2 = arith.constant 0 : index
    %2 = vector.load %arg2[%c0_1, %c0_2] : memref<256x128xbf16, #tpu.memory_space<vmem>>, vector<256x128xbf16>
    %cst = arith.constant dense<0.000000e+00> : vector<16x128xf32>
    %3 = tpu.matmul %1, %2, %cst {dimension_numbers = #tpu.dot_dimension_numbers<[1], [0], [0], [1], [0, 0, 1, 1], [], []>} : vector<16x256xbf16>, vector<256x128xbf16>, vector<16x128xf32> -> vector<16x128xf32>
    %c0_3 = arith.constant 0 : index
    %c0_4 = arith.constant 0 : index
    %4 = vector.load %arg3[%c0_3, %c0_4] : memref<1x128xf32, #tpu.memory_space<vmem>>, vector<1x128xf32>
    %5 = vector.broadcast %4 : vector<1x128xf32> to vector<16x128xf32>
    %6 = arith.addf %3, %5 : vector<16x128xf32>
    %c0_5 = arith.constant 0 : index
    %c0_6 = arith.constant 0 : index
    %7 = vector.load %arg4[%c0_5, %c0_6] : memref<16x128xf32, #tpu.memory_space<vmem>>, vector<16x128xf32>
    %8 = arith.addf %6, %7 : vector<16x128xf32>
    %cst_7 = arith.constant dense<0.000000e+00> : vector<16xf32>
    %9 = vector.multi_reduction <add>, %8, %cst_7 [1] : vector<16x128xf32> to vector<16xf32>
    %10 = vector.shape_cast %9 : vector<16xf32> to vector<16x1xf32>
    %cst_8 = arith.constant 7.812500e-03 : f32
    %11 = vector.broadcast %cst_8 : f32 to vector<16x1xf32>
    %12 = arith.mulf %10, %11 : vector<16x1xf32>
    %13 = vector.broadcast %12 : vector<16x1xf32> to vector<16x128xf32>
    %14 = arith.subf %8, %13 : vector<16x128xf32>
    %15 = arith.mulf %14, %14 : vector<16x128xf32>
    %cst_9 = arith.constant dense<0.000000e+00> : vector<16xf32>
    %16 = vector.multi_reduction <add>, %15, %cst_9 [1] : vector<16x128xf32> to vector<16xf32>
    %17 = vector.shape_cast %16 : vector<16xf32> to vector<16x1xf32>
    %cst_10 = arith.constant 7.812500e-03 : f32
    %18 = vector.broadcast %cst_10 : f32 to vector<16x1xf32>
    %19 = arith.mulf %17, %18 : vector<16x1xf32>
    %cst_11 = arith.constant 9.99999974E-6 : f32
    %20 = vector.broadcast %cst_11 : f32 to vector<16x1xf32>
    %21 = arith.addf %19, %20 : vector<16x1xf32>
    %22 = math.rsqrt %21 : vector<16x1xf32>
    %23 = vector.broadcast %22 : vector<16x1xf32> to vector<16x128xf32>
    %24 = arith.mulf %14, %23 : vector<16x128xf32>
    %c0_12 = arith.constant 0 : index
    %c0_13 = arith.constant 0 : index
    %25 = vector.load %arg5[%c0_12, %c0_13] : memref<1x128xf32, #tpu.memory_space<vmem>>, vector<1x128xf32>
    %26 = vector.broadcast %25 : vector<1x128xf32> to vector<16x128xf32>
    %27 = arith.mulf %24, %26 : vector<16x128xf32>
    %c0_14 = arith.constant 0 : index
    %c0_15 = arith.constant 0 : index
    %28 = vector.load %arg6[%c0_14, %c0_15] : memref<1x128xf32, #tpu.memory_space<vmem>>, vector<1x128xf32>
    %29 = vector.broadcast %28 : vector<1x128xf32> to vector<16x128xf32>
    %30 = arith.addf %27, %29 : vector<16x128xf32>
    %c0_16 = arith.constant 0 : index
    %c0_17 = arith.constant 0 : index
    %31 = vector.load %arg7[%c0_16, %c0_17] : memref<16x128xf32, #tpu.memory_space<vmem>>, vector<16x128xf32>
    tpu.vector_store %arg7[%c0_16, %c0_17], %30 {strides = array<i32>} : memref<16x128xf32, #tpu.memory_space<vmem>>, vector<16x128xf32>,
    return
  }
  func.func @transform_0(%arg0: i32) -> (i32, i32) {
    %c0_i32 = arith.constant 0 : i32
    %c0_i32_0 = arith.constant 0 : i32
    return %arg0, %c0_i32 : i32, i32
  }
  func.func @transform_1(%arg0: i32) -> (i32, i32) {
    %c0_i32 = arith.constant 0 : i32
    %c0_i32_0 = arith.constant 0 : i32
    %c0_i32_1 = arith.constant 0 : i32
    return %c0_i32, %c0_i32_0 : i32, i32
  }
  func.func @transform_2(%arg0: i32) -> (i32, i32) {
    %c0_i32 = arith.constant 0 : i32
    %c0_i32_0 = arith.constant 0 : i32
    %c0_i32_1 = arith.constant 0 : i32
    return %c0_i32, %c0_i32_0 : i32, i32
  }
  func.func @transform_3(%arg0: i32) -> (i32, i32) {
    %c0_i32 = arith.constant 0 : i32
    %c0_i32_0 = arith.constant 0 : i32
    return %arg0, %c0_i32 : i32, i32
  }
  func.func @transform_4(%arg0: i32) -> (i32, i32) {
    %c0_i32 = arith.constant 0 : i32
    %c0_i32_0 = arith.constant 0 : i32
    %c0_i32_1 = arith.constant 0 : i32
    return %c0_i32, %c0_i32_0 : i32, i32
  }
  func.func @transform_5(%arg0: i32) -> (i32, i32) {
    %c0_i32 = arith.constant 0 : i32
    %c0_i32_0 = arith.constant 0 : i32
    %c0_i32_1 = arith.constant 0 : i32
    return %c0_i32, %c0_i32_0 : i32, i32
  }
  func.func @transform_6(%arg0: i32) -> (i32, i32) {
    %c0_i32 = arith.constant 0 : i32
    %c0_i32_0 = arith.constant 0 : i32
    return %arg0, %c0_i32 : i32, i32
  }
}

</mosaic_0001>

<bundles_post_ra>
// kernel: tpu_custom_call.1
= control target key start
LH: loop header
LB: loop body
LE: loop exit
PB: predicated region body
PF: predicated region fallthrough
CT: control target
= control target key end

     0   :  { %11 = vsyncpa [#allocation3], 0  ;;  %s585_s0 = inlined_call_operand.hbm [shape: f32[16,256], index: 0, kind: input, shape index: {}]   ;;  %s586_s1 = inlined_call_operand.hbm [shape: bf16[256,128], index: 1, kind: input, shape index: {}]   ;;  %s587_s2 = inlined_call_operand.vmem [shape: f32[1,128], index: 2, kind: input, shape index: {}]   ;;  %s588_s3 = inlined_call_operand.hbm [shape: f32[16,128], index: 3, kind: input, shape index: {}]   ;;  %s589_s4 = inlined_call_operand.vmem [shape: f32[1,128], index: 4, kind: input, shape index: {}]   ;;  %s590_s5 = inlined_call_operand.vmem [shape: f32[1,128], index: 5, kind: input, shape index: {}]   ;;  %s591_s6 = inlined_call_operand.hbm [shape: f32[16,128], index: 6, kind: output, shape index: {}]  }
   0x1   :  { %12 = vsyncpa [#allocation6], 0 }
   0x2   :  { %13 = vsyncpa [#allocation4], 0  ;;  %s477_s21 = smov [#allocation5]   ;;  %s383_s25 = scalar_lea.hbm %s586_s1, 2048 }
   0x3   :  { %s31_s22 = sshll.u32 %s477_s21, 4  ;;  %p384_p0 = scmp.ne.s32.totalorder %s586_s1, %s383_s25  ;;  %s32_s22 = int_to_ptr.vmem [resolvable:$true] %s31_s22 }
   0x4   :  { %p387_p1 = scmp.lt.u32.totalorder %s383_s25, %s586_s1 }
   0x6   :  { %p389_p2 = pnand %p387_p1, %p384_p0 }
   0x8   :  { %392 = shalt.err (!%p389_p2)
}
   0x9   :  { %s393_s30 = scalar_lea.vmem %s32_s22, 2048  ;;  %p398_p4 = scmp.lt.s32.totalorder %s32_s22, %s32_s22 }
   0xa   :  { %p394_p3 = scmp.ne.s32.totalorder %s32_s22, %s393_s30  ;;  %p399_p5 = scmp.lt.s32.totalorder %s393_s30, %s393_s30 }
   0xc   :  { %p400_p6 = por %p399_p5, %p398_p4 }
   0xe   :  { %p401_p7 = pnand %p400_p6, %p394_p3 }
  0x10   :  { %404 = shalt.err (!%p401_p7)
}
  0x11   :  { %s478_s7 = smov 64   ;;  %s479_s8 = smov 4  }
  0x12   :  { %37 = dma.hbm_to_vmem [thread:$0]  %s586_s1, 2048, %s32_s22, [#allocation6], %s478_s7, %s478_s7, %s479_s8  }
  0x13   :  { %s480_s11 = smov [#allocation2]   ;;  %s405_s15 = scalar_lea.hbm %s585_s0, 512 }
  0x14   :  { %s19_s12 = sshll.u32 %s480_s11, 4  ;;  %p406_p8 = scmp.ne.s32.totalorder %s585_s0, %s405_s15  ;;  %s20_s12 = int_to_ptr.vmem [resolvable:$true] %s19_s12 }
  0x15   :  { %p409_p9 = scmp.lt.u32.totalorder %s405_s15, %s585_s0 }
  0x17   :  { %p411_p10 = pnand %p409_p9, %p406_p8 }
  0x19   :  { %414 = shalt.err (!%p411_p10)
}
  0x1a   :  { %s415_s20 = scalar_lea.vmem %s20_s12, 512  ;;  %p420_p12 = scmp.lt.s32.totalorder %s20_s12, %s20_s12 }
  0x1b   :  { %p416_p11 = scmp.ne.s32.totalorder %s20_s12, %s415_s20  ;;  %p421_p13 = scmp.lt.s32.totalorder %s415_s20, %s415_s20 }
  0x1d   :  { %p422_p0 = por %p421_p13, %p420_p12 }
  0x1f   :  { %p423_p1 = pnand %p422_p0, %p416_p11 }
  0x21   :  { %426 = shalt.err (!%p423_p1)
}
  0x22   :  { %s481_s1 = smov 256   ;;  %s482_s21 = smov 16  }
  0x23   :  { %25 = dma.hbm_to_vmem [thread:$0]  %s585_s0, 512, %s20_s12, [#allocation3], %s481_s1, %s481_s1, %s482_s21  }
  0x24   :  { %s483_s24 = smov [#allocation7]   ;;  %s427_s28 = scalar_lea.hbm %s588_s3, 256 }
  0x25   :  { %s45_s25 = sshll.u32 %s483_s24, 4  ;;  %p428_p2 = scmp.ne.s32.totalorder %s588_s3, %s427_s28  ;;  %s46_s25 = int_to_ptr.vmem [resolvable:$true] %s45_s25 }
  0x26   :  { %p431_p3 = scmp.lt.u32.totalorder %s427_s28, %s588_s3 }
  0x28   :  { %p433_p4 = pnand %p431_p3, %p428_p2 }
  0x2a   :  { %436 = shalt.err (!%p433_p4)
}
  0x2b   :  { %s437_s9 = scalar_lea.vmem %s46_s25, 256  ;;  %p442_p6 = scmp.lt.s32.totalorder %s46_s25, %s46_s25 }
  0x2c   :  { %p438_p5 = scmp.ne.s32.totalorder %s46_s25, %s437_s9  ;;  %p443_p7 = scmp.lt.s32.totalorder %s437_s9, %s437_s9 }
  0x2e   :  { %p444_p8 = por %p443_p7, %p442_p6 }
  0x30   :  { %p445_p9 = pnand %p444_p8, %p438_p5 }
  0x32   :  { %448 = shalt.err (!%p445_p9)
}
  0x33   :  { %s484_s0 = smov 128   ;;  %s485_s10 = smov 8  }
  0x34   :  { %51 = dma.hbm_to_vmem [thread:$0]  %s588_s3, 256, %s46_s25, [#allocation6], %s484_s0, %s484_s0, %s485_s10  }
  0x35   :  { %471 = dma.done.wait [#allocation3], 512  }
  0x36   :  { %472 = vsyncadd [#allocation3], 4294966784 }
  0x37   :  { %473 = dma.done.wait [#allocation6], 2304  }
  0x38   :  { %474 = vsyncadd [#allocation6], 4294964992  ;;  %v363_v0 = vld [vmem:[#allocation5 + $0x40] sm:$0xff]   ;;  %v365_v2 = vld [vmem:[#allocation5 + $0x48] sm:$0xff]   ;;  %s486_s17 = smov [#allocation8]  }
  0x39   :  { %v364_v1 = vld [vmem:[#allocation5] sm:$0xff]   ;;  %331 = vmatprep.subr.bf16.mxu0 %v363_v0  ;;  %v366_v3 = vld [vmem:[#allocation5 + $0x8] sm:$0xff]   ;;  %v367_v4 = vld [vmem:[#allocation5 + $0x50] sm:$0xff]   ;;  %s299_s18 = sshll.u32 %s486_s17, 4  ;;  %s300_s18 = int_to_ptr.vmem [resolvable:$true] %s299_s18 }
  0x3a   :  { %332 = vmatpush3.bf16.msra.mxu0 %v364_v1  ;;  %v368_v5 = vld [vmem:[#allocation5 + $0x10] sm:$0xff]   ;;  %v369_v6 = vld [vmem:[#allocation5 + $0x58] sm:$0xff]   ;;  %v371_v8 = vld [vmem:[#allocation5 + $0x60] sm:$0xff]   ;;  %s449_s19 = scalar_lea.vmem %s300_s18, 256  ;;  %p454_p11 = scmp.lt.s32.totalorder %s300_s18, %s300_s18 }
  0x3b   :  { %333 = vmatprep.subr.bf16.mxu0 %v365_v2  ;;  %v370_v7 = vld [vmem:[#allocation5 + $0x18] sm:$0xff]   ;;  %v372_v9 = vld [vmem:[#allocation5 + $0x20] sm:$0xff]   ;;  %v373_v10 = vld [vmem:[#allocation5 + $0x68] sm:$0xff]   ;;  %p450_p10 = scmp.ne.s32.totalorder %s300_s18, %s449_s19  ;;  %p455_p12 = scmp.lt.s32.totalorder %s449_s19, %s449_s19 }
  0x3c   :  { %v67_v11 = vld [vmem:[#allocation2 + $0x8] sm:$0xff]  ;;  %v69_v12 = vld [vmem:[#allocation2 + $0x18] sm:$0xff]  ;;  %v375_v15 = vld [vmem:[#allocation5 + $0x70] sm:$0xff]  }
  0x3d   :  { %v71_v13 = vpack.c.bf16 %v69_v12, %v67_v11  ;;  %v374_v14 = vld [vmem:[#allocation5 + $0x28] sm:$0xff]   ;;  %v376_v16 = vld [vmem:[#allocation5 + $0x30] sm:$0xff]   ;;  %v377_v17 = vld [vmem:[#allocation5 + $0x78] sm:$0xff]   ;;  %p456_p13 = por %p455_p12, %p454_p11 }
  0x3e   :  { %334 = vmatpush3.bf16.msra.mxu0 %v366_v3  ;;  %v378_v18 = vld [vmem:[#allocation5 + $0x38] sm:$0xff]   ;;  %v66_v19 = vld [vmem:[#allocation2] sm:$0xff]  ;;  %v68_v20 = vld [vmem:[#allocation2 + $0x10] sm:$0xff] }
  0x3f   :  { %335 = vmatprep.subr.bf16.mxu0 %v367_v4  ;;  %239 = vmatprep.mubr.bf16.mxu0 %v71_v13  ;;  %v70_v21 = vpack.c.bf16 %v68_v20, %v66_v19  ;;  %v312_v23 = vld [vmem:[%s587_s2] ss:$0 sm:$0xff]  ;;  %v249_v33 = vld [vmem:[#allocation7 + $0x8] sm:$0xff]  ;;  %p457_p0 = pnand %p456_p13, %p450_p10 }
  0x40   :  { %v248_v28 = vld [vmem:[#allocation7] sm:$0xff] }
  0x41   :  { %v329_v50 = vld [vmem:[%s589_s4] ss:$0 sm:$0xff] }
  0x42   :  { %336 = vmatpush3.bf16.msra.mxu0 %v368_v5  ;;  %v330_v52 = vld [vmem:[%s590_s5] ss:$0 sm:$0xff] }
  0x43   :  { %337 = vmatprep.subr.bf16.mxu0 %v369_v6 }
  0x46   :  { %338 = vmatpush3.bf16.msra.mxu0 %v370_v7 }
  0x47   :  { %339 = vmatprep.subr.bf16.mxu0 %v371_v8 }
  0x4a   :  { %340 = vmatpush3.bf16.msra.mxu0 %v372_v9 }
  0x4b   :  { %341 = vmatprep.subr.bf16.mxu0 %v373_v10 }
  0x4e   :  { %342 = vmatpush3.bf16.msra.mxu0 %v374_v14 }
  0x4f   :  { %343 = vmatprep.subr.bf16.mxu0 %v375_v15 }
  0x52   :  { %344 = vmatpush3.bf16.msra.mxu0 %v376_v16 }
  0x53   :  { %345 = vmatprep.subr.bf16.mxu0 %v377_v17 }
  0x56   :  { %346 = vmatpush3.bf16.msra.mxu0 %v378_v18 }
  0x59   :  { %240 = vmatmul.mubr.bf16.vlgmr.msra.gmra.mrb[0].mxu0 %v70_v21 }
 0x12c   :  { %v347_v22 = vpop.f32.mrb[0].mxu0 }
 0x12d   :  { %v348_v24 = vpop.f32.mrb[1].mxu0 }
 0x12e   :  { %v349_v25 = vadd.f32 %v348_v24, %v347_v22  ;;  %v350_v26 = vpop.f32.mrb[2].mxu0 }
 0x12f   :  { %v351_v27 = vpop.f32.mrb[3].mxu0 }
 0x130   :  { %v242_v29 = vadd.f32 %v349_v25, %v312_v23  ;;  %v352_v30 = vadd.f32 %v351_v27, %v350_v26 }
 0x132   :  { %v245_v31 = vadd.f32 %v352_v30, %v312_v23  ;;  %v250_v32 = vadd.f32 %v248_v28, %v242_v29 }
 0x134   :  { %252 = vadd.xlane.f32.xlu0 %v250_v32  ;;  %v251_v34 = vadd.f32 %v249_v33, %v245_v31 }
 0x138   :  { %254 = vadd.xlane.f32.xlu0 %v251_v34 }
 0x1c1   :  { %v253_v35 = vpop.xlane.xlu0 %252 }
 0x1c2   :  { %v256_v36 = vmul.f32 0.0078125, %v253_v35 }
 0x1c4   :  { %v258_v37 = vsub.f32 %v250_v32, %v256_v36 }
 0x1c5   :  { %v255_v38 = vpop.xlane.xlu0 %254 }
 0x1c6   :  { %v257_v39 = vmul.f32 0.0078125, %v255_v38  ;;  %v260_v40 = vmul.f32 %v258_v37, %v258_v37 }
 0x1c8   :  { %v259_v41 = vsub.f32 %v251_v34, %v257_v39  ;;  %262 = vadd.xlane.f32.xlu1 %v260_v40 }
 0x1ca   :  { %v261_v42 = vmul.f32 %v259_v41, %v259_v41 }
 0x1cc   :  { %264 = vadd.xlane.f32.xlu1 %v261_v42 }
 0x255   :  { %v263_v43 = vpop.xlane.xlu1 %262 }
 0x256   :  { %v266_v44 = vmul.f32 0.0078125, %v263_v43 }
 0x258   :  { %v268_v45 = vadd.f32 1e-05, %v266_v44 }
 0x259   :  { %v265_v46 = vpop.xlane.xlu1 %264 }
 0x25a   :  { %379 = vrsqrt.f32 %v268_v45  ;;  %v267_v47 = vmul.f32 0.0078125, %v265_v46 }
 0x25c   :  { %v269_v48 = vadd.f32 1e-05, %v267_v47 }
 0x25e   :  { %381 = vrsqrt.f32 %v269_v48 }
 0x264   :  { %v380_v49 = vpop.eup %379 }
 0x265   :  { %v272_v51 = vmul.f32 %v380_v49, %v258_v37 }
 0x267   :  { %v281_v53 = vmul.f32 %v329_v50, %v272_v51 }
 0x268   :  { %v382_v54 = vpop.eup %381 }
 0x269   :  { %v273_v55 = vmul.f32 %v382_v54, %v259_v41  ;;  %v290_v56 = vadd.f32 %v330_v52, %v281_v53 }
 0x26b   :  { %v282_v57 = vmul.f32 %v329_v50, %v273_v55  ;;  %292 = vst [vmem:[#allocation8] sm:$0xff] %v290_v56 }
 0x26d   :  { %v291_v58 = vadd.f32 %v330_v52, %v282_v57 }
 0x26f   :  { %293 = vst [vmem:[#allocation8 + $0x8] sm:$0xff] %v291_v58 }
 0x270   :  { %460 = shalt.err (!%p457_p0)
}
 0x271   :  { %s461_s20 = scalar_lea.hbm %s591_s6, 256 }
 0x272   :  { %p462_p1 = scmp.ne.s32.totalorder %s591_s6, %s461_s20  ;;  %p465_p2 = scmp.lt.u32.totalorder %s461_s20, %s591_s6 }
 0x274   :  { %p467_p3 = pnand %p465_p2, %p462_p1 }
 0x276   :  { %470 = shalt.err (!%p467_p3)
}
 0x277   :  { %305 = dma.vmem_to_hbm [thread:$0]  %s300_s18, 256, %s591_s6, [#allocation4], %s484_s0, %s484_s0, %s485_s10  }
 0x278   :  { %475 = dma.done.wait [#allocation4], 256  }
 0x279   :  { %476 = vsyncadd [#allocation4], 4294967040 }
 0x27a   :  { %309 = vsyncpa [#allocation3], 1 }
 0x27b   :  { %310 = vsyncpa [#allocation6], 1 }
 0x27c   :  { %311 = vsyncpa [#allocation4], 1 }

</bundles_post_ra>
